<compile_context>
chip_gen: v7x
topology: tpu7x:2x2x1
jax: 0.10.0
libtpu: 0.0.40
codegen_flags: <defaults>
</compile_context>

<pallas_src>
import functools

import jax
import jax.numpy as jnp
from jax import lax
from jax.experimental import pallas as pl
from jax.experimental.pallas import tpu as pltpu


# ----------------------------------------------------------------------------- helpers
def _round_up(x, m):
    return (x + m - 1) // m * m


def _sublane_multiple(*dtypes):
    """Minimum second-to-last-dim tile: 8 (4-byte) / 16 (2-byte) / 32 (1-byte)."""
    m = 8
    for dt in dtypes:
        m = max(m, 32 // jnp.dtype(dt).itemsize)
    return m


@functools.lru_cache(maxsize=None)
def _vmem_limits():
    """(working-set budget, max vmem_limit_bytes) per TPU generation."""
    try:
        cap = int(pltpu.get_tpu_info().vmem_capacity_bytes)
    except Exception:
        cap = 64 << 20  # conservative: assume the smallest per-core VMEM (v7x)
    return (cap * 3) // 4, (cap * 7) // 8


# ----------------------------------------------------------------------------- kernels
def _logreg_kernel_fullk(x_ref, w_ref, b_ref, o_ref):
    """Grid = (M_tiles,). Full-K block: one MXU matmul + bias, no scratch."""
    acc = jnp.dot(
        x_ref[...].astype(w_ref.dtype),       # MXU compute dtype (bf16 by default)
        w_ref[...],
        preferred_element_type=jnp.float32,   # f32 accumulation
    )
    o_ref[...] = (acc + b_ref[...]).astype(o_ref.dtype)


def _logreg_kernel_ktiled(x_ref, w_ref, b_ref, o_ref, acc_ref, *, k_total, tk):
    """Fallback for huge ft_in. Grid = (M_tiles, K_tiles); K last, 'arbitrary'.
    The ragged K tail (k_total % tk) of the last K block is masked in-register,
    so neither x nor W needs a wrapper-side pad (no extra HBM round trip)."""
    kk = pl.program_id(1)

    @pl.when(kk == 0)
    def _():
        acc_ref[...] = jnp.zeros_like(acc_ref)

    x = x_ref[...].astype(w_ref.dtype)
    w = w_ref[...]
    if k_total % tk != 0:  # static: compiled in only when K is ragged
        col = kk * tk + lax.broadcasted_iota(jnp.int32, x.shape, 1)
        x = jnp.where(col < k_total, x, jnp.zeros_like(x))
        row = kk * tk + lax.broadcasted_iota(jnp.int32, w.shape, 0)
        w = jnp.where(row < k_total, w, jnp.zeros_like(w))

    acc_ref[...] += jnp.dot(x, w, preferred_element_type=jnp.float32)

    @pl.when(kk == pl.num_programs(1) - 1)
    def _():
        o_ref[...] = (acc_ref[...] + b_ref[...]).astype(o_ref.dtype)


# ----------------------------------------------------------------------------- params
def init_logreg_params(key, ft_in, nb_classes):
    """Matches the PyTorch module: xavier_uniform_ weight, zero bias."""
    bound = (6.0 / (ft_in + nb_classes)) ** 0.5
    weight = jax.random.uniform(
        key, (nb_classes, ft_in), minval=-bound, maxval=bound, dtype=jnp.float32
    )
    bias = jnp.zeros((nb_classes,), dtype=jnp.float32)
    return weight, bias


def prepare_logreg_params(weight, bias, compute_dtype=jnp.bfloat16):
    """One-time prep (off the per-call path): transpose weight to [ft_in, Np] with
    the class axis zero-padded to a multiple of 128 (lane-dense output), cast to
    the MXU compute dtype, and shape bias as a [1, Np] f32 row.
    Use compute_dtype=jnp.float32 if bit-parity with f32 nn.Linear is required."""
    nb_classes, ft_in = weight.shape
    np_ = _round_up(nb_classes, 128)
    w_t = (
        jnp.zeros((ft_in, np_), dtype=compute_dtype)
        .at[:, :nb_classes]
        .set(weight.T.astype(compute_dtype))
    )
    b_row = (
        jnp.zeros((1, np_), dtype=jnp.float32)
        .at[:, :nb_classes]
        .set(bias[None, :].astype(jnp.float32))
    )
    return w_t, b_row


# ----------------------------------------------------------------------------- forward
@functools.partial(
    jax.jit,
    static_argnames=("nb_classes", "tm", "tk", "trim", "out_dtype", "force_ktiled"),
)
def logreg_forward(x, w_t, b_row, *, nb_classes, tm=None, tk=2048, trim=True,
                   out_dtype=None, force_ktiled=False):
    """x: [N, ft_in] (f32 or bf16); w_t: [ft_in, Np] prepared; b_row: [1, Np] f32.

    Returns [N, nb_classes] (trim=True; note the trim is a separate XLA slice that
    re-reads the whole [N, Np] slab from HBM) or the padded lane-dense [N, Np]
    slab (trim=False, preferred for fused downstream consumers).
    out_dtype defaults to x.dtype; pass jnp.bfloat16 to halve output writeback.
    tm (optional) caps the auto-chosen M tile; tk is the K tile of the fallback."""
    n, k = x.shape
    kw, np_ = w_t.shape
    assert kw == k, "weight/activation feature-dim mismatch"
    assert tk % 128 == 0, "tk must be a multiple of 128 (x block lane dim)"
    out_dtype = x.dtype if out_dtype is None else out_dtype

    sub = _sublane_multiple(x.dtype, out_dtype)
    budget, limit_cap = _vmem_limits()

    bx = x.dtype.itemsize
    bw = w_t.dtype.itemsize
    bo = jnp.dtype(out_dtype).itemsize

    bm_cap = _round_up(n, sub)
    bm_cap = min(bm_cap, _round_up(tm, sub) if tm is not None else 4096)

    # Full-K working set: everything counted double-buffered (Pallas double-buffers
    # W/bias even with a constant index_map).
    fullk_fixed = 2 * k * np_ * bw + 2 * np_ * 4           # W + bias
    fullk_per_row = 2 * k * bx + 2 * np_ * bo               # x tile + out tile
    bm_fit = (budget - fullk_fixed) // fullk_per_row if budget > fullk_fixed else 0
    bm = min(bm_cap, (bm_fit // sub) * sub)

    if bm >= sub and not force_ktiled:
        # ---- fast path: full-K blocks, 1-D grid over M only ---------------------
        if pl.cdiv(n, bm) < 2 and n > sub:
            # >= 2 M tiles so v7x megacore shards the "parallel" axis across both TCs
            bm = max(sub, _round_up(pl.cdiv(n, 2), sub))
        est = fullk_fixed + fullk_per_row * bm
        vmem_limit = min(limit_cap, max(est * 3 // 2, 32 << 20))
        # TODO(synk): sweep pipeline_mode=pl.Buffered(3) on the x spec for v7x.
        out = pl.pallas_call(
            _logreg_kernel_fullk,
            out_shape=jax.ShapeDtypeStruct((n, np_), out_dtype),
            grid_spec=pltpu.PrefetchScalarGridSpec(
                num_scalar_prefetch=0,
                grid=(pl.cdiv(n, bm),),
                in_specs=[
                    pl.BlockSpec((bm, k), lambda i: (i, 0)),    # x tile (full K)
                    pl.BlockSpec((k, np_), lambda i: (0, 0)),   # W, resident
                    pl.BlockSpec((1, np_), lambda i: (0, 0)),   # bias row
                ],
                out_specs=pl.BlockSpec((bm, np_), lambda i: (i, 0)),
            ),
            compiler_params=pltpu.CompilerParams(
                dimension_semantics=("parallel",),
                vmem_limit_bytes=vmem_limit,
            ),
        )(x, w_t, b_row)
    else:
        # ---- huge-ft_in fallback: K-tiled grid with an f32 accumulator ----------
        tk_eff = min(tk, _round_up(k, 128))
        kt_fixed = 2 * tk_eff * np_ * bw + 2 * np_ * 4
        kt_per_row = 2 * tk_eff * bx + 2 * np_ * bo + np_ * 4   # + acc scratch
        bm_fit = (budget - kt_fixed) // kt_per_row if budget > kt_fixed else sub
        bm = max(sub, min(bm_cap, (bm_fit // sub) * sub, 1024))
        if pl.cdiv(n, bm) < 2 and n > sub:
            bm = max(sub, _round_up(pl.cdiv(n, 2), sub))
        est = kt_fixed + kt_per_row * bm
        vmem_limit = min(limit_cap, max(est * 3 // 2, 32 << 20))
        out = pl.pallas_call(
            functools.partial(_logreg_kernel_ktiled, k_total=k, tk=tk_eff),
            out_shape=jax.ShapeDtypeStruct((n, np_), out_dtype),
            grid_spec=pltpu.PrefetchScalarGridSpec(
                num_scalar_prefetch=0,
                grid=(pl.cdiv(n, bm), pl.cdiv(k, tk_eff)),
                in_specs=[
                    pl.BlockSpec((bm, tk_eff), lambda i, kk: (i, kk)),
                    pl.BlockSpec((tk_eff, np_), lambda i, kk: (kk, 0)),
                    pl.BlockSpec((1, np_), lambda i, kk: (0, 0)),
                ],
                out_specs=pl.BlockSpec((bm, np_), lambda i, kk: (i, 0)),
                scratch_shapes=[pltpu.VMEM((bm, np_), jnp.float32)],
            ),
            compiler_params=pltpu.CompilerParams(
                dimension_semantics=("parallel", "arbitrary"),
                vmem_limit_bytes=vmem_limit,
            ),
        )(x, w_t, b_row)

    if trim:
        # Separate XLA slice pass; fused consumers should prefer trim=False.
        out = out[:, :nb_classes]
    return out


# ----------------------------------------------------------------------------- demo
if __name__ == "__main__":
    key = jax.random.PRNGKey(0)
    k_x, k_w, k_x2, k_w2 = jax.random.split(key, 4)

    # --- fast path (full-K, multi-tile M grid + partial last M block) -----------
    n_nodes, ft_in, nb_classes = 600, 384, 7
    x = jax.random.normal(k_x, (n_nodes, ft_in), dtype=jnp.float32)
    weight, bias = init_logreg_params(k_w, ft_in, nb_classes)
    w_t, b_row = prepare_logreg_params(weight, bias)   # one-time prep, off hot path

    out = logreg_forward(x, w_t, b_row, nb_classes=nb_classes)
    out = jax.block_until_ready(out)

    ref = x @ weight.T + bias                          # f32 nn.Linear reference
    assert out.shape == (n_nodes, nb_classes)
    assert jnp.allclose(out, ref, atol=5e-2, rtol=5e-2)

    # --- K-tiled fallback (forced; exercises ragged-K in-kernel masking) --------
    n2, k2, c2 = 96, 200, 5
    x2 = jax.random.normal(k_x2, (n2, k2), dtype=jnp.float32)
    weight2, bias2 = init_logreg_params(k_w2, k2, c2)
    w2_t, b2_row = prepare_logreg_params(weight2, bias2)

    out2 = logreg_forward(x2, w2_t, b2_row, nb_classes=c2, force_ktiled=True, tk=128)
    out2 = jax.block_until_ready(out2)

    ref2 = x2 @ weight2.T + bias2
    assert out2.shape == (n2, c2)
    assert jnp.allclose(out2, ref2, atol=5e-2, rtol=5e-2)

    print("KERNEL_OK")
</pallas_src>

<mosaic_0001>
module attributes {stable_mosaic.version = 11 : i64} {
  func.func @_logreg_kernel_fullk(%arg0: i32, %arg1: memref<304x384xf32, #tpu.memory_space<vmem>>, %arg2: memref<384x128xbf16, #tpu.memory_space<vmem>>, %arg3: memref<1x128xf32, #tpu.memory_space<vmem>>, %arg4: memref<304x128xf32, #tpu.memory_space<vmem>>) attributes {dimension_semantics = [#tpu.dimension_semantics<parallel>], iteration_bounds = array<i64: 2>, scalar_prefetch = 0 : i64, scratch_operands = 0 : i64, tpu.core_type = #tpu.core_type<tc>, window_params = [{transform_indices = @transform_0, window_bounds = array<i64: 304, 384>}, {pipeline_mode = #tpu.pipeline_mode<synchronous>, transform_indices = @transform_1, window_bounds = array<i64: 384, 128>}, {pipeline_mode = #tpu.pipeline_mode<synchronous>, transform_indices = @transform_2, window_bounds = array<i64: 1, 128>}, {transform_indices = @transform_3, window_bounds = array<i64: 304, 128>}]} {
    %c0 = arith.constant 0 : index
    %c0_0 = arith.constant 0 : index
    %0 = vector.load %arg1[%c0, %c0_0] : memref<304x384xf32, #tpu.memory_space<vmem>>, vector<304x384xf32>
    %1 = arith.truncf %0 : vector<304x384xf32> to vector<304x384xbf16>
    %c0_1 = arith.constant 0 : index
    %c0_2 = arith.constant 0 : index
    %2 = vector.load %arg2[%c0_1, %c0_2] : memref<384x128xbf16, #tpu.memory_space<vmem>>, vector<384x128xbf16>
    %cst = arith.constant dense<0.000000e+00> : vector<304x128xf32>
    %3 = tpu.matmul %1, %2, %cst {dimension_numbers = #tpu.dot_dimension_numbers<[1], [0], [0], [1], [0, 0, 1, 1], [], []>} : vector<304x384xbf16>, vector<384x128xbf16>, vector<304x128xf32> -> vector<304x128xf32>
    %c0_3 = arith.constant 0 : index
    %c0_4 = arith.constant 0 : index
    %4 = vector.load %arg3[%c0_3, %c0_4] : memref<1x128xf32, #tpu.memory_space<vmem>>, vector<1x128xf32>
    %5 = vector.broadcast %4 : vector<1x128xf32> to vector<304x128xf32>
    %6 = arith.addf %3, %5 : vector<304x128xf32>
    %c0_5 = arith.constant 0 : index
    %c0_6 = arith.constant 0 : index
    %7 = vector.load %arg4[%c0_5, %c0_6] : memref<304x128xf32, #tpu.memory_space<vmem>>, vector<304x128xf32>
    tpu.vector_store %arg4[%c0_5, %c0_6], %6 {strides = array<i32>} : memref<304x128xf32, #tpu.memory_space<vmem>>, vector<304x128xf32>,
    return
  }
  func.func @transform_0(%arg0: i32) -> (i32, i32) {
    %c0_i32 = arith.constant 0 : i32
    %c0_i32_0 = arith.constant 0 : i32
    return %arg0, %c0_i32 : i32, i32
  }
  func.func @transform_1(%arg0: i32) -> (i32, i32) {
    %c0_i32 = arith.constant 0 : i32
    %c0_i32_0 = arith.constant 0 : i32
    %c0_i32_1 = arith.constant 0 : i32
    return %c0_i32, %c0_i32_0 : i32, i32
  }
  func.func @transform_2(%arg0: i32) -> (i32, i32) {
    %c0_i32 = arith.constant 0 : i32
    %c0_i32_0 = arith.constant 0 : i32
    %c0_i32_1 = arith.constant 0 : i32
    return %c0_i32, %c0_i32_0 : i32, i32
  }
  func.func @transform_3(%arg0: i32) -> (i32, i32) {
    %c0_i32 = arith.constant 0 : i32
    %c0_i32_0 = arith.constant 0 : i32
    return %arg0, %c0_i32 : i32, i32
  }
}

</mosaic_0001>

<bundles_post_ra>
// kernel: logreg_forward.1
= control target key start
LH: loop header
LB: loop body
LE: loop exit
PB: predicated region body
PF: predicated region fallthrough
CT: control target
= control target key end

     0   :  { %8 = vsyncpa [#allocation3], 0  ;;  %s2520_s0 = inlined_call_operand.hbm [shape: f32[600,384], index: 0, kind: input, shape index: {}]   ;;  %s2521_s1 = inlined_call_operand.hbm [shape: bf16[384,128], index: 1, kind: input, shape index: {}]   ;;  %s2522_s2 = inlined_call_operand.vmem [shape: f32[1,128], index: 2, kind: input, shape index: {}]   ;;  %s2523_s3 = inlined_call_operand.vmem [shape: f32[600,128], index: 3, kind: output, shape index: {}]  }
   0x1   :  { %10 = vsyncpa [#allocation3 + $0x1], 0 }
   0x2   :  { %11 = vsyncpa [#allocation5], 0  ;;  %s1966_s12 = smov 0   ;;  %s1968_s13 = smov 0  }
   0x3   :  { %s1970_s14 = smov 0   ;;  %s1972_s15 = smov 0  }
   0x4 LB: > { %s1985_s16 = sadd.s32 4294967295, %s1903_s15   ;;  %s1988_s17 = sadd.s32 1, %s1903_s15   ;;  %s1903_s15 = sphi %s1972_s15, %s2546_s15   ;;  %s1899_s14 = sphi %s1970_s14, %s2545_s14   ;;  %s1895_s13 = sphi %s1968_s13, %s2544_s13   ;;  %s1891_s12 = sphi %s1966_s12, %s2543_s12  }
   0x5   : > { %s21_s18 = ssub.s32 %s1903_s15, %s1988_s17  ;;  %s24_s19 = sadd.s32 1, %s1899_s14 }
   0x6   : > { %p22_p0 = scmp.eq.s32.totalorder %s21_s18, 0  ;;  %p31_p1 = scmp.ne.s32.totalorder %s1899_s14, %s1895_s13 }
   0x7   : > { %p32_p2 = scmp.eq.s32.totalorder %s1903_s15, 0  ;;  %p37_p3 = scmp.ne.s32.totalorder %s1895_s13, %s1891_s12 }
   0x8   : > { %s1998_s20 = scalar_select %p22_p0, %s1899_s14, %s24_s19  }
   0x9   : > { %p2000_p4 = por %p32_p2, %p31_p1  ;;  %p2524_p5 = scmp.eq.s32.totalorder %s1985_s16, 0 }
   0xa   : > { %p103_p6 = scmp.eq.s32.totalorder %s1985_s16, 1  ;;  %p1385_p7 = scmp.ge.s32.totalorder %s1903_s15, 1 }
   0xb   : > { %s2527_s21 = scalar_select %p2000_p4, 1, 0 }
   0xc   : > { %p2009_p8 = por %p2524_p5, %p37_p3  ;;  %p116_p9 = scmp.lt.s32.totalorder %s1903_s15, 3 }
   0xd   : > { %p2014_p10 = por %p103_p6, %p31_p1  ;;  %s1937_s25 = smov [#allocation4]  }
   0xe   : > { %s2528_s22 = scalar_select %p2009_p8, 1, 0 }
   0xf   : > { %s2529_s23 = scalar_select %p2014_p10, 1, 0 }
  0x10   : > { %p2018_p11 = pnand %p1385_p7, %p116_p9  ;;  %s128_s26 = sshll.u32 %s1937_s25, 4  ;;  %s129_s26 = int_to_ptr.vmem [resolvable:$true] %s128_s26 }
  0x11   : > { %s1777_s30 = scalar_lea.hbm %s2521_s1, 3072 }
  0x12   : > { %s2530_s24 = scalar_select %p2018_p11, 1, 0 }
  0x13   : > { %p1637_p12 = pneg %p2018_p11  ;;  %p1778_p0 = scmp.ne.s32.totalorder %s2521_s1, %s1777_s30 }
  0x14   : > { %p1784_p6 = scmp.lt.u32.totalorder %s1777_s30, %s2521_s1 }
  0x15   : > { %p2026_p13 = pnand %p1637_p12, %p2524_p5 }
  0x17   : > { %p1779_p1 = pneg %p2026_p13 }
  0x19   : > { %p1780_p2 = pnand %p1779_p1, %p1778_p0 }
  0x1b   : > { %p1781_p3 = pneg %p1780_p2 }
  0x1d   : > { %p1786_p7 = pnand %p1784_p6, %p1781_p3 }
  0x1f   : > { %1789 = shalt.err (!%p1786_p7)
}
  0x20   : > { %s1790_s8 = scalar_lea.vmem %s129_s26, 3072  ;;  %p1798_p10 = scmp.lt.s32.totalorder %s129_s26, %s129_s26 }
  0x21   : > { %p1791_p9 = scmp.ne.s32.totalorder %s129_s26, %s1790_s8  ;;  %p1799_p8 = scmp.lt.s32.totalorder %s1790_s8, %s1790_s8 }
  0x23   : > { %p1793_p12 = pnand %p1791_p9, %p1779_p1  ;;  %p1800_p11 = por %p1799_p8, %p1798_p10 }
  0x25   : > { %p1794_p5 = pneg %p1793_p12 }
  0x27   : > { %p1801_p4 = pnand %p1800_p11, %p1794_p5 }
  0x29   : > { %1804 = shalt.err (!%p1801_p4)
}
  0x2a   : > { %s1938_s9 = smov 64   ;;  %s1939_s10 = smov 4  }
  0x2b   : > { %1640 = dma.hbm_to_vmem [thread:$0]  (!%p2026_p13), %s2521_s1, 3072, %s129_s26, [#allocation5], %s1938_s9, %s1938_s9, %s1939_s10  }
  0x2c   : > { %p1387_p0 = scmp.ge.s32.totalorder %s1903_s15, 2 }
  0x2d   : > { %p2532_p2 = scmp.ne.s32.totalorder (!%p1387_p0), %s2527_s21, 0 }
  0x2e   : > { %141 = sbr.rel (%p1387_p0) target bundleno = 89 (0x59), region = 24 }
  0x35   : > { %144 = sbr.rel (!%p2532_p2) target bundleno = 89 (0x59), region = 28  ;;  %s145_s18 = sand.u32 (%p2532_p2), 1, %s1899_s14  }
  0x36   : > { %s150_s19 = smul.u32 (%p2532_p2), 38, %s1903_s15  ;;  %s2054_s30 = scalar_lea.sflag (%p2532_p2), [#allocation3], %s145_s18 }
  0x37   : > { %s1628_s25 = smul.u32 (%p2532_p2), 912, %s145_s18 }
  0x38   : > { %s151_s28 = ssub.s32 (%p2532_p2), 75, %s150_s19 }
  0x39   : > { %p152_p4 = scmp.lt.s32.totalorder (%p2532_p2), %s151_s28, 38  ;;  %s149_s26 = scalar_lea.vmem (%p2532_p2), [#allocation2], %s1628_s25 }
  0x3c   : > { %s2548_s28 = smov (!%p152_p4, %s151_s28), 38 }
  0x3d   : > { %s2051_s29 = smul.u32 384, %s2548_s28 }
  0x3f   : > { %s157_s27 = ssub.s32 14592, %s2051_s29 }
  0x40   : > { %158 = vsyncadd %s2054_s30, %s157_s27  ;;  %p1390_p5 = scmp.ne.s32.totalorder %s2051_s29, 0  ;;  %s1642_s21 = smul.u32 14592, %s1903_s15 }
  0x41   : > { %s164_s4 = sshll.u32 %s149_s26, 4  ;;  %s1809_s15 = scalar_lea.hbm %s2520_s0, 28800  ;;  %s2064_s4 = int_to_ptr.vmem [resolvable:$true] %s164_s4 }
  0x42   : > { %s2062_s7 = scalar_lea.hbm %s2520_s0, %s1642_s21 }
  0x43   : > { %s1805_s8 = scalar_lea.hbm %s2062_s7, %s2051_s29  ;;  %p1810_p13 = scmp.lt.u32.totalorder %s2062_s7, %s2520_s0 }
  0x44   : > { %p1806_p8 = scmp.ne.s32.totalorder %s2062_s7, %s1805_s8  ;;  %p1811_p1 = scmp.lt.u32.totalorder %s1809_s15, %s1805_s8 }
  0x45   : > { %p1813_p6 = scmp.lt.u32.totalorder %s1805_s8, %s2062_s7 }
  0x46   : > { %p1807_p10 = pnand %p1806_p8, %p1390_p5  ;;  %p1812_p3 = por %p1811_p1, %p1810_p13 }
  0x48   : > { %p1808_p11 = pneg %p1807_p10  ;;  %p1814_p7 = por %p1813_p6, %p1812_p3 }
  0x4a   : > { %p1815_p9 = pnand %p1814_p7, %p1808_p11 }
  0x4c   : > { %1818 = shalt.err (!%p1815_p9)
}
  0x4d   : > { %s1819_s18 = scalar_lea.vmem %s2064_s4, %s2051_s29  ;;  %s1940_s19 = smov [#allocation2]  }
  0x4e   : > { %p1820_p12 = scmp.ne.s32.totalorder %s2064_s4, %s1819_s18  ;;  %s1823_s25 = sshll.u32 %s1940_s19, 4  ;;  %s1824_s25 = int_to_ptr.vmem [resolvable:$false] %s1823_s25 }
  0x4f   : > { %s1825_s28 = scalar_lea.vmem %s1824_s25, 29184  ;;  %p1826_p4 = scmp.lt.s32.totalorder %s2064_s4, %s1824_s25 }
  0x50   : > { %p1821_p0 = pnand %p1820_p12, %p1390_p5  ;;  %p1827_p8 = scmp.lt.s32.totalorder %s1825_s28, %s1819_s18 }
  0x52   : > { %p1822_p2 = pneg %p1821_p0  ;;  %p1828_p10 = por %p1827_p8, %p1826_p4 }
  0x54   : > { %p1829_p13 = pnand %p1828_p10, %p1822_p2 }
  0x56   : > { %1832 = shalt.err (!%p1829_p13)
}
  0x57   : > { %s1941_s27 = smov 384   ;;  %s1942_s26 = smov 24  }
  0x58   : > { %170 = dma.hbm_to_vmem [thread:$0]  (%p1390_p5), %s2062_s7, %s2051_s29, %s2064_s4, %s2054_s30, %s1941_s27, %s1941_s27, %s1942_s26  }
  0x59 PF: > { %p2533_p11 = scmp.ne.s32.totalorder %s2530_s24, 0 }
  0x5a   : > { %s2094_s21 = sand.u32 (!%p2533_p11), 1, %s1895_s13   ;;  %p2534_p1 = scmp.ne.s32.totalorder (!%p2533_p11), %s2528_s22, 0 }
  0x5b   : > { %176 = sbr.rel (%p2533_p11) target bundleno = 601 (0x259), region = 32  ;;  %s179_s6 = scalar_lea.sflag (!%p2533_p11), [#allocation3], %s2094_s21 }
  0x5c   : > { %s1630_s5 = smul.u32 (!%p2533_p11), 912, %s2094_s21 }
  0x5e   : > { %s2098_s8 = scalar_lea.vmem (!%p2533_p11), [#allocation2], %s1630_s5 }
  0x62   : > { %1882 = dma.done.wait (%p2534_p1), %s179_s6, 14592  }
  0x63   : > { %1884 = vsyncadd (%p2534_p1), %s179_s6, 4294952704  ;;  %p2535_p5 = scmp.eq.s32.totalorder %s1985_s16, 0 }
  0x65   : > { %1886 = dma.done.wait (%p2535_p5), [#allocation5], 3072   ;;  %p2536_p3 = pmov %p2535_p5 }
  0x66   : > { %v1943_v0 = vmov 0   ;;  %v1944_v1 = vmov 0.0   ;;  %vm1945_vm0 = vmmov 0   ;;  %v1749_v2 = vld [vmem:[#allocation4] sm:$0xff]   ;;  %v1750_v3 = vld [vmem:[#allocation4 + $0x8] sm:$0xff]   ;;  %v1751_v4 = vld [vmem:[#allocation4 + $0x10] sm:$0xff]  }
  0x67   : > { %1888 = vsyncadd (%p2536_p3), [#allocation5], 4294964224  ;;  %590 = vmatprep.subr.bf16.mxu1 %v1943_v0  ;;  %1460 = vmatprep.subr.bf16.mxu0 %v1944_v1  ;;  %v1757_v5 = vld [vmem:[#allocation4 + $0x80] sm:$0xff]   ;;  %v1752_v6 = vld [vmem:[#allocation4 + $0x18] sm:$0xff]   ;;  %s1631_s22 = smul.u32 304, %s2094_s21  ;;  %p2537_p6 = scmp.ne.s32.totalorder %s2529_s23, 0 }
  0x68   : > { %1476 = vmatprep.mubr.msk.bf16.mxu0 %vm1945_vm0, %v1944_v1  ;;  %591 = vmatpush1.bf16.msra.mxu1 %v1749_v2  ;;  %v1759_v7 = vld [vmem:[#allocation4 + $0x88] sm:$0xff]   ;;  %v1753_v8 = vld [vmem:[#allocation4 + $0x20] sm:$0xff]   ;;  %v1761_v9 = vld [vmem:[#allocation4 + $0x90] sm:$0xff]   ;;  %s1005_s4 = smul.u32 (%p2537_p6), 38, %s1985_s16 }
  0x69   : > { %592 = vmatprep.subr.bf16.mxu1 %v1943_v0  ;;  %1461 = vmatpush3.bf16.msra.mxu0 %v1757_v5  ;;  %v1754_v10 = vld [vmem:[#allocation4 + $0x28] sm:$0xff]   ;;  %v1763_v11 = vld [vmem:[#allocation4 + $0x98] sm:$0xff]   ;;  %v1755_v12 = vld [vmem:[#allocation4 + $0x30] sm:$0xff]   ;;  %s2292_s30 = scalar_lea.vmem [#allocation6], %s1631_s22   ;;  %s1432_s7 = smul.u32 (%p2537_p6), 304, %s1985_s16 }
  0x6a   : > { %1462 = vmatprep.subr.bf16.mxu0 %v1944_v1  ;;  %v1765_v13 = vld [vmem:[#allocation4 + $0xa0] sm:$0xff]   ;;  %v221_v14 = vld [vmem:[%s2098_s8 + $0x8] sm:$0xff]  ;;  %v1769_v20 = vld [vmem:[#allocation4 + $0xb0] sm:$0xff]   ;;  %s1006_s9 = ssub.s32 (%p2537_p6), 75, %s1005_s4 }
  0x6b   : > { %v224_v15 = vld [vmem:[%s2098_s8 + $0x20] sm:$0xff]  ;;  %v1756_v17 = vld [vmem:[#allocation4 + $0x38] sm:$0xff]   ;;  %v1767_v18 = vld [vmem:[#allocation4 + $0xa8] sm:$0xff]   ;;  %p1007_p7 = scmp.lt.s32.totalorder (%p2537_p6), %s1006_s9, 38  ;;  %s2375_s11 = scalar_lea.vmem (%p2537_p6), %s2523_s3, %s1432_s7  }
  0x6c   : > { %593 = vmatpush1.bf16.msra.mxu1 %v1750_v3  ;;  %v335_v16 = vpack.c.bf16 %v224_v15, %v221_v14  ;;  %v1758_v19 = vld [vmem:[#allocation4 + $0x40] sm:$0xff]   ;;  %v1760_v21 = vld [vmem:[#allocation4 + $0x48] sm:$0xff]   ;;  %v1771_v22 = vld [vmem:[#allocation4 + $0xb8] sm:$0xff]  }
  0x6d   : > { %594 = vmatprep.subr.bf16.mxu1 %v1943_v0  ;;  %1463 = vmatpush3.bf16.msra.mxu0 %v1759_v7  ;;  %v222_v23 = vld [vmem:[%s2098_s8 + $0x10] sm:$0xff]  ;;  %v225_v24 = vld [vmem:[%s2098_s8 + $0x28] sm:$0xff]  ;;  %v228_v28 = vld [vmem:[%s2098_s8 + $0x40] sm:$0xff] }
  0x6e   : > { %1464 = vmatprep.subr.bf16.mxu0 %v1944_v1  ;;  %622 = vmatprep.mubr.bf16.mxu1 %v335_v16  ;;  %v336_v25 = vpack.c.bf16 %v225_v24, %v222_v23  ;;  %v1762_v26 = vld [vmem:[#allocation4 + $0x50] sm:$0xff]   ;;  %v1764_v27 = vld [vmem:[#allocation4 + $0x58] sm:$0xff]   ;;  %v1766_v31 = vld [vmem:[#allocation4 + $0x60] sm:$0xff]  }
  0x6f   : > { %v231_v29 = vld [vmem:[%s2098_s8 + $0x58] sm:$0xff]  ;;  %v234_v33 = vld [vmem:[%s2098_s8 + $0x70] sm:$0xff]  ;;  %v237_v34 = vld [vmem:[%s2098_s8 + $0x88] sm:$0xff] }
  0x70   : > { %595 = vmatpush1.bf16.msra.mxu1 %v1751_v4  ;;  %v339_v30 = vpack.c.bf16 %v231_v29, %v228_v28  ;;  %v1768_v32 = vld [vmem:[#allocation4 + $0x68] sm:$0xff]   ;;  %v342_v35 = vpack.c.bf16 %v237_v34, %v234_v33  ;;  %v1770_v36 = vld [vmem:[#allocation4 + $0x70] sm:$0xff]   ;;  %v1772_v37 = vld [vmem:[#allocation4 + $0x78] sm:$0xff]  }
  0x71   : > { %596 = vmatprep.subr.bf16.mxu1 %v1943_v0  ;;  %1465 = vmatpush3.bf16.msra.mxu0 %v1761_v9  ;;  %v220_v38 = vld [vmem:[%s2098_s8] sm:$0xff]  ;;  %v223_v39 = vld [vmem:[%s2098_s8 + $0x18] sm:$0xff]  ;;  %v230_v43 = vld [vmem:[%s2098_s8 + $0x50] sm:$0xff] }
  0x72   : > { %1466 = vmatprep.subr.bf16.mxu0 %v1944_v1  ;;  %v240_v40 = vld [vmem:[%s2098_s8 + $0xa0] sm:$0xff]  ;;  %v243_v41 = vld [vmem:[%s2098_s8 + $0xb8] sm:$0xff]  ;;  %v334_v44 = vpack.c.bf16 %v223_v39, %v220_v38  ;;  %v226_v47 = vld [vmem:[%s2098_s8 + $0x30] sm:$0xff] }
  0x73   : > { %v227_v42 = vld [vmem:[%s2098_s8 + $0x38] sm:$0xff]  ;;  %v345_v45 = vpack.c.bf16 %v243_v41, %v240_v40  ;;  %v229_v48 = vld [vmem:[%s2098_s8 + $0x48] sm:$0xff]  ;;  %v246_v49 = vld [vmem:[%s2098_s8 + $0xd0] sm:$0xff] }
  0x74   : > { %597 = vmatpush1.bf16.msra.mxu1 %v1752_v6  ;;  %v338_v46 = vpack.c.bf16 %v230_v43, %v227_v42  ;;  %v249_v50 = vld [vmem:[%s2098_s8 + $0xe8] sm:$0xff]  ;;  %v236_v52 = vld [vmem:[%s2098_s8 + $0x80] sm:$0xff]  ;;  %v337_v53 = vpack.c.bf16 %v229_v48, %v226_v47  ;;  %v235_v57 = vld [vmem:[%s2098_s8 + $0x78] sm:$0xff] }
  0x75   : > { %598 = vmatprep.subr.bf16.mxu1 %v1943_v0  ;;  %1467 = vmatpush3.bf16.msra.mxu0 %v1763_v11  ;;  %v233_v51 = vld [vmem:[%s2098_s8 + $0x68] sm:$0xff]  ;;  %v348_v54 = vpack.c.bf16 %v249_v50, %v246_v49  ;;  %v232_v56 = vld [vmem:[%s2098_s8 + $0x60] sm:$0xff]  ;;  %v255_v59 = vld [vmem:[%s2098_s8 + $0x118] sm:$0xff] }
  0x76   : > { %1468 = vmatprep.subr.bf16.mxu0 %v1944_v1  ;;  %v341_v55 = vpack.c.bf16 %v236_v52, %v233_v51  ;;  %v252_v58 = vld [vmem:[%s2098_s8 + $0x100] sm:$0xff]  ;;  %v239_v60 = vld [vmem:[%s2098_s8 + $0x98] sm:$0xff]  ;;  %v242_v61 = vld [vmem:[%s2098_s8 + $0xb0] sm:$0xff]  ;;  %v340_v62 = vpack.c.bf16 %v235_v57, %v232_v56 }
  0x77   : > { %v351_v63 = vpack.c.bf16 %v255_v59, %v252_v58  ;;  %v238_v2 = vld [vmem:[%s2098_s8 + $0x90] sm:$0xff]  ;;  %v241_v3 = vld [vmem:[%s2098_s8 + $0xa8] sm:$0xff]  ;;  %v248_v7 = vld [vmem:[%s2098_s8 + $0xe0] sm:$0xff] }
  0x78   : > { %599 = vmatpush1.bf16.msra.mxu1 %v1753_v8  ;;  %v258_v4 = vld [vmem:[%s2098_s8 + $0x130] sm:$0xff]  ;;  %v261_v5 = vld [vmem:[%s2098_s8 + $0x148] sm:$0xff]  ;;  %v343_v8 = vpack.c.bf16 %v241_v3, %v238_v2  ;;  %v244_v11 = vld [vmem:[%s2098_s8 + $0xc0] sm:$0xff] }
  0x79   : > { %600 = vmatprep.subr.bf16.mxu1 %v1943_v0  ;;  %1469 = vmatpush3.bf16.msra.mxu0 %v1765_v13  ;;  %v245_v6 = vld [vmem:[%s2098_s8 + $0xc8] sm:$0xff]  ;;  %v354_v9 = vpack.c.bf16 %v261_v5, %v258_v4  ;;  %v264_v13 = vld [vmem:[%s2098_s8 + $0x160] sm:$0xff]  ;;  %v267_v14 = vld [vmem:[%s2098_s8 + $0x178] sm:$0xff] }
  0x7a   : > { %1470 = vmatprep.subr.bf16.mxu0 %v1944_v1  ;;  %v251_v15 = vld [vmem:[%s2098_s8 + $0xf8] sm:$0xff]  ;;  %v254_v16 = vld [vmem:[%s2098_s8 + $0x110] sm:$0xff]  ;;  %v273_v23 = vld [vmem:[%s2098_s8 + $0x1a8] sm:$0xff] }
  0x7b   : > { %v257_v24 = vld [vmem:[%s2098_s8 + $0x128] sm:$0xff]  ;;  %v256_v29 = vld [vmem:[%s2098_s8 + $0x120] sm:$0xff]  ;;  %v263_v33 = vld [vmem:[%s2098_s8 + $0x158] sm:$0xff] }
  0x7c   : > { %601 = vmatpush1.bf16.msra.mxu1 %v1754_v10  ;;  %v347_v10 = vpack.c.bf16 %v248_v7, %v245_v6  ;;  %v266_v34 = vld [vmem:[%s2098_s8 + $0x170] sm:$0xff]  ;;  %v265_v39 = vld [vmem:[%s2098_s8 + $0x168] sm:$0xff]  ;;  %v272_v43 = vld [vmem:[%s2098_s8 + $0x1a0] sm:$0xff] }
  0x7d   : > { %602 = vmatprep.subr.bf16.mxu1 %v1943_v0  ;;  %1471 = vmatpush3.bf16.msra.mxu0 %v1767_v18  ;;  %v357_v18 = vpack.c.bf16 %v267_v14, %v264_v13  ;;  %v262_v38 = vld [vmem:[%s2098_s8 + $0x150] sm:$0xff]  ;;  %v285_v41 = vld [vmem:[%s2098_s8 + $0x208] sm:$0xff]  ;;  %v268_v47 = vld [vmem:[%s2098_s8 + $0x180] sm:$0xff] }
  0x7e   : > { %1472 = vmatprep.subr.bf16.mxu0 %v1944_v1  ;;  %v282_v40 = vld [vmem:[%s2098_s8 + $0x1f0] sm:$0xff]  ;;  %v269_v42 = vld [vmem:[%s2098_s8 + $0x188] sm:$0xff]  ;;  %v271_v48 = vld [vmem:[%s2098_s8 + $0x198] sm:$0xff] }
  0x7f   : > { %v288_v49 = vld [vmem:[%s2098_s8 + $0x220] sm:$0xff]  ;;  %v291_v50 = vld [vmem:[%s2098_s8 + $0x238] sm:$0xff]  ;;  %v278_v52 = vld [vmem:[%s2098_s8 + $0x1d0] sm:$0xff] }
  0x80   : > { %603 = vmatpush1.bf16.msra.mxu1 %v1755_v12  ;;  %v247_v12 = vld [vmem:[%s2098_s8 + $0xd8] sm:$0xff]  ;;  %v274_v56 = vld [vmem:[%s2098_s8 + $0x1b0] sm:$0xff]  ;;  %v277_v57 = vld [vmem:[%s2098_s8 + $0x1c8] sm:$0xff] }
  0x81   : > { %604 = vmatprep.subr.bf16.mxu1 %v1943_v0  ;;  %1473 = vmatpush3.bf16.msra.mxu0 %v1769_v20  ;;  %v250_v20 = vld [vmem:[%s2098_s8 + $0xf0] sm:$0xff]  ;;  %v275_v51 = vld [vmem:[%s2098_s8 + $0x1b8] sm:$0xff]  ;;  %v297_v59 = vld [vmem:[%s2098_s8 + $0x268] sm:$0xff] }
  0x82   : > { %1474 = vmatprep.subr.bf16.mxu0 %v1944_v1  ;;  %v294_v58 = vld [vmem:[%s2098_s8 + $0x250] sm:$0xff]  ;;  %v280_v2 = vld [vmem:[%s2098_s8 + $0x1e0] sm:$0xff]  ;;  %v283_v3 = vld [vmem:[%s2098_s8 + $0x1f8] sm:$0xff] }
  0x83   : > { %v300_v4 = vld [vmem:[%s2098_s8 + $0x280] sm:$0xff]  ;;  %v303_v5 = vld [vmem:[%s2098_s8 + $0x298] sm:$0xff]  ;;  %v290_v7 = vld [vmem:[%s2098_s8 + $0x230] sm:$0xff] }
  0x84   : > { %605 = vmatpush1.bf16.msra.mxu1 %v1756_v17  ;;  %v346_v17 = vpack.c.bf16 %v247_v12, %v244_v11  ;;  %v287_v6 = vld [vmem:[%s2098_s8 + $0x218] sm:$0xff]  ;;  %v286_v11 = vld [vmem:[%s2098_s8 + $0x210] sm:$0xff]  ;;  %v289_v12 = vld [vmem:[%s2098_s8 + $0x228] sm:$0xff] }
  0x85   : > { %606 = vmatprep.subr.bf16.mxu1 %v1943_v0  ;;  %1475 = vmatpush3.bf16.msra.mxu0 %v1771_v22  ;;  %v270_v22 = vld [vmem:[%s2098_s8 + $0x190] sm:$0xff]  ;;  %v309_v14 = vld [vmem:[%s2098_s8 + $0x2c8] sm:$0xff] }
  0x86   : > { %v306_v13 = vld [vmem:[%s2098_s8 + $0x2b0] sm:$0xff] }
  0x88   : > { %607 = vmatpush1.bf16.msra.mxu1 %v1758_v19  ;;  %1477 = vmatmul.mubr.bf16.vlgmr.msra.gmra.mrb[0].mxu0 %v336_v25  ;;  %v350_v19 = vpack.c.bf16 %v254_v16, %v251_v15  ;;  %v260_v25 = vld [vmem:[%s2098_s8 + $0x140] sm:$0xff]  ;;  %v293_v15 = vld [vmem:[%s2098_s8 + $0x248] sm:$0xff] }
  0x89   : > { %608 = vmatprep.subr.bf16.mxu1 %v1943_v0  ;;  %1480 = vmatprep.mubr.msk.bf16.mxu0 %vm1945_vm0, %v1944_v1  ;;  %v353_v28 = vpack.c.bf16 %v260_v25, %v257_v24  ;;  %v296_v16 = vld [vmem:[%s2098_s8 + $0x260] sm:$0xff]  ;;  %v299_v24 = vld [vmem:[%s2098_s8 + $0x278] sm:$0xff]  ;;  %v302_v25 = vld [vmem:[%s2098_s8 + $0x290] sm:$0xff] }
  0x8c   : > { %609 = vmatpush1.bf16.msra.mxu1 %v1760_v21  ;;  %v253_v21 = vld [vmem:[%s2098_s8 + $0x108] sm:$0xff] }
  0x8d   : > { %610 = vmatprep.subr.bf16.mxu1 %v1943_v0 }
  0x90   : > { %611 = vmatpush1.bf16.msra.mxu1 %v1762_v26  ;;  %1481 = vmatmul.mubr.bf16.gmra.mrb[4].mxu0 %v339_v30  ;;  %v349_v26 = vpack.c.bf16 %v253_v21, %v250_v20  ;;  %v259_v30 = vld [vmem:[%s2098_s8 + $0x138] sm:$0xff]  ;;  %v292_v20 = vld [vmem:[%s2098_s8 + $0x240] sm:$0xff] }
  0x91   : > { %612 = vmatprep.subr.bf16.mxu1 %v1943_v0  ;;  %1484 = vmatprep.mubr.msk.bf16.mxu0 %vm1945_vm0, %v1944_v1  ;;  %v295_v21 = vld [vmem:[%s2098_s8 + $0x258] sm:$0xff] }
  0x94   : > { %613 = vmatpush1.bf16.msra.mxu1 %v1764_v27  ;;  %v360_v27 = vpack.c.bf16 %v273_v23, %v270_v22  ;;  %v312_v22 = vld [vmem:[%s2098_s8 + $0x2e0] sm:$0xff]  ;;  %v315_v23 = vld [vmem:[%s2098_s8 + $0x2f8] sm:$0xff] }
  0x95   : > { %614 = vmatprep.subr.bf16.mxu1 %v1943_v0 }
  0x98   : > { %615 = vmatpush1.bf16.msra.mxu1 %v1766_v31  ;;  %1485 = vmatmul.mubr.bf16.gmra.mrb[8].mxu0 %v342_v35  ;;  %v276_v31 = vld [vmem:[%s2098_s8 + $0x1c0] sm:$0xff]  ;;  %v352_v35 = vpack.c.bf16 %v259_v30, %v256_v29  ;;  %v298_v29 = vld [vmem:[%s2098_s8 + $0x270] sm:$0xff]  ;;  %v301_v30 = vld [vmem:[%s2098_s8 + $0x288] sm:$0xff] }
  0x99   : > { %616 = vmatprep.subr.bf16.mxu1 %v1943_v0  ;;  %1488 = vmatprep.mubr.msk.bf16.mxu0 %vm1945_vm0, %v1944_v1 }
  0x9c   : > { %617 = vmatpush1.bf16.msra.mxu1 %v1768_v32  ;;  %v279_v32 = vld [vmem:[%s2098_s8 + $0x1d8] sm:$0xff] }
  0x9d   : > { %618 = vmatprep.subr.bf16.mxu1 %v1943_v0 }
  0xa0   : > { %619 = vmatpush1.bf16.msra.mxu1 %v1770_v36  ;;  %1489 = vmatmul.mubr.bf16.gmra.mrb[12].mxu0 %v345_v45  ;;  %v363_v36 = vpack.c.bf16 %v279_v32, %v276_v31  ;;  %v366_v45 = vpack.c.bf16 %v285_v41, %v282_v40  ;;  %v318_v31 = vld [vmem:[%s2098_s8 + $0x310] sm:$0xff]  ;;  %v321_v32 = vld [vmem:[%s2098_s8 + $0x328] sm:$0xff]  ;;  %v324_v40 = vld [vmem:[%s2098_s8 + $0x340] sm:$0xff] }
  0xa1   : > { %620 = vmatprep.subr.bf16.mxu1 %v1943_v0  ;;  %1492 = vmatprep.mubr.msk.bf16.mxu0 %vm1945_vm0, %v1944_v1  ;;  %v344_v0 = vpack.c.bf16 %v242_v61, %v239_v60  ;;  %v281_v60 = vld [vmem:[%s2098_s8 + $0x1e8] sm:$0xff]  ;;  %v284_v61 = vld [vmem:[%s2098_s8 + $0x200] sm:$0xff]  ;;  %v327_v41 = vld [vmem:[%s2098_s8 + $0x358] sm:$0xff] }
  0xa4   : > { %621 = vmatpush1.bf16.msra.mxu1 %v1772_v37  ;;  %v356_v37 = vpack.c.bf16 %v266_v34, %v263_v33  ;;  %v305_v33 = vld [vmem:[%s2098_s8 + $0x2a8] sm:$0xff]  ;;  %v308_v34 = vld [vmem:[%s2098_s8 + $0x2c0] sm:$0xff] }
  0xa7   : > { %623 = vmatmul.mubr.bf16.vlgmr.msra.gmra.mrb[0].mxu1 %v334_v44  ;;  %v355_v44 = vpack.c.bf16 %v265_v39, %v262_v38  ;;  %v304_v38 = vld [vmem:[%s2098_s8 + $0x2a0] sm:$0xff]  ;;  %v307_v39 = vld [vmem:[%s2098_s8 + $0x2b8] sm:$0xff] }
  0xa8   : > { %630 = vmatprep.mubr.bf16.mxu1 %v338_v46  ;;  %1493 = vmatmul.mubr.bf16.gmra.mrb[16].mxu0 %v348_v54  ;;  %v359_v46 = vpack.c.bf16 %v272_v43, %v269_v42  ;;  %v369_v54 = vpack.c.bf16 %v291_v50, %v288_v49  ;;  %v311_v42 = vld [vmem:[%s2098_s8 + $0x2d8] sm:$0xff]  ;;  %v314_v43 = vld [vmem:[%s2098_s8 + $0x2f0] sm:$0xff]  ;;  %v333_v50 = vld [vmem:[%s2098_s8 + $0x388] sm:$0xff] }
  0xa9   : > { %1496 = vmatprep.mubr.msk.bf16.mxu0 %vm1945_vm0, %v1944_v1  ;;  %v330_v49 = vld [vmem:[%s2098_s8 + $0x370] sm:$0xff] }
  0xaf   : > { %631 = vmatmul.mubr.bf16.gmra.mrb[4].mxu1 %v337_v53  ;;  %v358_v53 = vpack.c.bf16 %v271_v48, %v268_v47  ;;  %v310_v47 = vld [vmem:[%s2098_s8 + $0x2d0] sm:$0xff]  ;;  %v313_v48 = vld [vmem:[%s2098_s8 + $0x2e8] sm:$0xff] }
  0xb0   : > { %638 = vmatprep.mubr.bf16.mxu1 %v341_v55  ;;  %1497 = vmatmul.mubr.bf16.gmra.mrb[20].mxu0 %v351_v63  ;;  %v362_v55 = vpack.c.bf16 %v278_v52, %v275_v51  ;;  %v372_v63 = vpack.c.bf16 %v297_v59, %v294_v58  ;;  %v317_v51 = vld [vmem:[%s2098_s8 + $0x308] sm:$0xff]  ;;  %v320_v52 = vld [vmem:[%s2098_s8 + $0x320] sm:$0xff]  ;;  %v323_v58 = vld [vmem:[%s2098_s8 + $0x338] sm:$0xff] }
  0xb1   : > { %1500 = vmatprep.mubr.msk.bf16.mxu0 %vm1945_vm0, %v1944_v1 }
  0xb7   : > { %639 = vmatmul.mubr.bf16.gmra.mrb[8].mxu1 %v340_v62  ;;  %v361_v62 = vpack.c.bf16 %v277_v57, %v274_v56  ;;  %v316_v56 = vld [vmem:[%s2098_s8 + $0x300] sm:$0xff]  ;;  %v319_v57 = vld [vmem:[%s2098_s8 + $0x318] sm:$0xff] }
  0xb8   : > { %646 = vmatprep.mubr.bf16.mxu1 %v344_v0  ;;  %1501 = vmatmul.mubr.bf16.gmra.mrb[24].mxu0 %v354_v9  ;;  %v365_v0 = vpack.c.bf16 %v284_v61, %v281_v60  ;;  %v375_v9 = vpack.c.bf16 %v303_v5, %v300_v4  ;;  %v382_v59 = vpack.c.bf16 %v319_v57, %v316_v56  ;;  %v322_v61 = vld [vmem:[%s2098_s8 + $0x330] sm:$0xff]  ;;  %v328_v4 = vld [vmem:[%s2098_s8 + $0x360] sm:$0xff]  ;;  %v331_v5 = vld [vmem:[%s2098_s8 + $0x378] sm:$0xff] }
  0xb9   : > { %1504 = vmatprep.mubr.msk.bf16.mxu0 %vm1945_vm0, %v1944_v1 }
  0xbf   : > { %647 = vmatmul.mubr.bf16.gmra.mrb[12].mxu1 %v343_v8  ;;  %v364_v8 = vpack.c.bf16 %v283_v3, %v280_v2 }
  0xc0   : > { %654 = vmatprep.mubr.bf16.mxu1 %v347_v10  ;;  %1505 = vmatmul.mubr.bf16.gmra.mrb[28].mxu0 %v357_v18  ;;  %v368_v10 = vpack.c.bf16 %v290_v7, %v287_v6  ;;  %v378_v18 = vpack.c.bf16 %v309_v14, %v306_v13  ;;  %v388_v6 = vpack.c.bf16 %v331_v5, %v328_v4 }
  0xc1   : > { %1508 = vmatprep.mubr.msk.bf16.mxu0 %vm1945_vm0, %v1944_v1 }
  0xc7   : > { %655 = vmatmul.mubr.bf16.gmra.mrb[16].mxu1 %v346_v17  ;;  %v367_v17 = vpack.c.bf16 %v289_v12, %v286_v11 }
  0xc8   : > { %662 = vmatprep.mubr.bf16.mxu1 %v350_v19  ;;  %1509 = vmatmul.mubr.bf16.gmra.mrb[32].mxu0 %v360_v27  ;;  %v371_v19 = vpack.c.bf16 %v296_v16, %v293_v15  ;;  %v381_v27 = vpack.c.bf16 %v315_v23, %v312_v22 }
  0xc9   : > { %1512 = vmatprep.mubr.msk.bf16.mxu0 %vm1945_vm0, %v1944_v1 }
  0xcf   : > { %663 = vmatmul.mubr.bf16.gmra.mrb[20].mxu1 %v349_v26  ;;  %v370_v26 = vpack.c.bf16 %v295_v21, %v292_v20 }
  0xd0   : > { %670 = vmatprep.mubr.bf16.mxu1 %v353_v28  ;;  %1513 = vmatmul.mubr.bf16.gmra.mrb[36].mxu0 %v363_v36  ;;  %v374_v28 = vpack.c.bf16 %v302_v25, %v299_v24  ;;  %v384_v36 = vpack.c.bf16 %v321_v32, %v318_v31 }
  0xd1   : > { %1516 = vmatprep.mubr.msk.bf16.mxu0 %vm1945_vm0, %v1944_v1 }
  0xd7   : > { %671 = vmatmul.mubr.bf16.gmra.mrb[24].mxu1 %v352_v35  ;;  %v373_v35 = vpack.c.bf16 %v301_v30, %v298_v29 }
  0xd8   : > { %678 = vmatprep.mubr.bf16.mxu1 %v356_v37  ;;  %1517 = vmatmul.mubr.bf16.gmra.mrb[40].mxu0 %v366_v45  ;;  %v377_v37 = vpack.c.bf16 %v308_v34, %v305_v33  ;;  %v387_v45 = vpack.c.bf16 %v327_v41, %v324_v40 }
  0xd9   : > { %1520 = vmatprep.mubr.msk.bf16.mxu0 %vm1945_vm0, %v1944_v1 }
  0xdf   : > { %679 = vmatmul.mubr.bf16.gmra.mrb[28].mxu1 %v355_v44  ;;  %v376_v44 = vpack.c.bf16 %v307_v39, %v304_v38 }
  0xe0   : > { %686 = vmatprep.mubr.bf16.mxu1 %v359_v46  ;;  %1521 = vmatmul.mubr.bf16.gmra.mrb[44].mxu0 %v369_v54  ;;  %v380_v46 = vpack.c.bf16 %v314_v43, %v311_v42  ;;  %v390_v54 = vpack.c.bf16 %v333_v50, %v330_v49 }
  0xe1   : > { %1524 = vmatprep.mubr.msk.bf16.mxu0 %vm1945_vm0, %v1944_v1 }
  0xe7   : > { %687 = vmatmul.mubr.bf16.gmra.mrb[32].mxu1 %v358_v53  ;;  %v379_v53 = vpack.c.bf16 %v313_v48, %v310_v47 }
  0xe8   : > { %694 = vmatprep.mubr.bf16.mxu1 %v362_v55  ;;  %1525 = vmatmul.mubr.bf16.gmra.mrb[48].mxu0 %v372_v63  ;;  %v383_v55 = vpack.c.bf16 %v320_v52, %v317_v51  ;;  %v329_v63 = vld [vmem:[%s2098_s8 + $0x368] sm:$0xff] }
  0xe9   : > { %1528 = vmatprep.mubr.msk.bf16.mxu0 %vm1945_vm0, %v1944_v1 }
  0xef   : > { %695 = vmatmul.mubr.bf16.gmra.mrb[36].mxu1 %v361_v62  ;;  %v325_v62 = vld [vmem:[%s2098_s8 + $0x348] sm:$0xff] }
  0xf0   : > { %702 = vmatprep.mubr.bf16.mxu1 %v365_v0  ;;  %1529 = vmatmul.mubr.bf16.gmra.mrb[52].mxu0 %v375_v9  ;;  %v332_v0 = vld [vmem:[%s2098_s8 + $0x380] sm:$0xff]  ;;  %v385_v2 = vpack.c.bf16 %v325_v62, %v322_v61 }
  0xf1   : > { %1532 = vmatprep.mubr.msk.bf16.mxu0 %vm1945_vm0, %v1944_v1  ;;  %v389_v3 = vpack.c.bf16 %v332_v0, %v329_v63 }
  0xf7   : > { %703 = vmatmul.mubr.bf16.gmra.mrb[40].mxu1 %v364_v8 }
  0xf8   : > { %710 = vmatprep.mubr.bf16.mxu1 %v368_v10  ;;  %1533 = vmatmul.mubr.bf16.gmra.mrb[56].mxu0 %v378_v18 }
  0xf9   : > { %1536 = vmatprep.mubr.msk.bf16.mxu0 %vm1945_vm0, %v1944_v1 }
  0xff   : > { %711 = vmatmul.mubr.bf16.gmra.mrb[44].mxu1 %v367_v17 }
 0x100   : > { %718 = vmatprep.mubr.bf16.mxu1 %v371_v19  ;;  %1537 = vmatmul.mubr.bf16.gmra.mrb[60].mxu0 %v381_v27  ;;  %v2288_v19 = vld [vmem:[%s2522_s2] ss:$0 sm:$0xff] }
 0x101   : > { %1540 = vmatprep.mubr.msk.bf16.mxu0 %vm1945_vm0, %v1944_v1 }
 0x107   : > { %719 = vmatmul.mubr.bf16.gmra.mrb[48].mxu1 %v370_v26 }
 0x108   : > { %726 = vmatprep.mubr.bf16.mxu1 %v374_v28  ;;  %1541 = vmatmul.mubr.bf16.gmra.mrb[64].mxu0 %v384_v36 }
 0x109   : > { %1544 = vmatprep.mubr.msk.bf16.mxu0 %vm1945_vm0, %v1944_v1 }
 0x10f   : > { %727 = vmatmul.mubr.bf16.gmra.mrb[52].mxu1 %v373_v35 }
 0x110   : > { %734 = vmatprep.mubr.bf16.mxu1 %v377_v37  ;;  %1545 = vmatmul.mubr.bf16.gmra.mrb[68].mxu0 %v387_v45 }
 0x111   : > { %1548 = vmatprep.mubr.msk.bf16.mxu0 %vm1945_vm0, %v1944_v1  ;;  %v326_v1 = vld [vmem:[%s2098_s8 + $0x350] sm:$0xff] }
 0x112   : > { %v386_v60 = vpack.c.bf16 %v326_v1, %v323_v58 }
 0x117   : > { %735 = vmatmul.mubr.bf16.gmra.mrb[56].mxu1 %v376_v44 }
 0x118   : > { %742 = vmatprep.mubr.bf16.mxu1 %v380_v46  ;;  %1549 = vmatmul.mubr.bf16.gmra.mrb[72].mxu0 %v390_v54 }
 0x11f   : > { %743 = vmatmul.mubr.bf16.gmra.mrb[60].mxu1 %v379_v53 }
 0x120   : > { %750 = vmatprep.mubr.bf16.mxu1 %v383_v55 }
 0x127   : > { %751 = vmatmul.mubr.bf16.gmra.mrb[64].mxu1 %v382_v59 }
 0x128   : > { %758 = vmatprep.mubr.bf16.mxu1 %v386_v60 }
 0x12f   : > { %759 = vmatmul.mubr.bf16.gmra.mrb[68].mxu1 %v385_v2 }
 0x130   : > { %766 = vmatprep.mubr.bf16.mxu1 %v389_v3 }
 0x137   : > { %767 = vmatmul.mubr.bf16.gmra.mrb[72].mxu1 %v388_v6 }
 0x15b   : > { %v809_v7 = vpop.f32.mrb[0].mxu0 }
 0x15c   : > { %v1478_v8 = vpop.f32.mrb[1].mxu0 }
 0x15d   : > { %v812_v9 = vpop.f32.mrb[2].mxu0 }
 0x15e   : > { %v1479_v10 = vpop.f32.mrb[3].mxu0 }
 0x163   : > { %v817_v11 = vpop.f32.mrb[4].mxu0 }
 0x164   : > { %v1482_v12 = vpop.f32.mrb[5].mxu0 }
 0x165   : > { %v820_v13 = vpop.f32.mrb[6].mxu0 }
 0x166   : > { %v1483_v14 = vpop.f32.mrb[7].mxu0 }
 0x16b   : > { %v825_v15 = vpop.f32.mrb[8].mxu0 }
 0x16c   : > { %v1486_v16 = vpop.f32.mrb[9].mxu0 }
 0x16d   : > { %v828_v17 = vpop.f32.mrb[10].mxu0 }
 0x16e   : > { %v1487_v18 = vpop.f32.mrb[11].mxu0 }
 0x173   : > { %v833_v21 = vpop.f32.mrb[12].mxu0 }
 0x174   : > { %v1490_v24 = vpop.f32.mrb[13].mxu0 }
 0x175   : > { %v836_v26 = vpop.f32.mrb[14].mxu0 }
 0x176   : > { %v1491_v30 = vpop.f32.mrb[15].mxu0 }
 0x17a   : > { %v624_v20 = vpop.f32.mrb[0].mxu1 }
 0x17b   : > { %v625_v22 = vadd.f32 %v2288_v19, %v624_v20  ;;  %v626_v23 = vpop.f32.mrb[1].mxu1  ;;  %v841_v33 = vpop.f32.mrb[16].mxu0 }
 0x17c   : > { %v627_v25 = vpop.f32.mrb[2].mxu1  ;;  %v1494_v36 = vpop.f32.mrb[17].mxu0 }
 0x17d   : > { %v810_v27 = vadd.f32 %v809_v7, %v625_v22  ;;  %v628_v28 = vadd.f32 %v2288_v19, %v627_v25  ;;  %v629_v29 = vpop.f32.mrb[3].mxu1  ;;  %v844_v38 = vpop.f32.mrb[18].mxu0 }
 0x17e   : > { %v1495_v42 = vpop.f32.mrb[19].mxu0 }
 0x17f   : > { %960 = vst [vmem:[%s2292_s30] sm:$0xff] %v810_v27  ;;  %v813_v31 = vadd.f32 %v812_v9, %v628_v28 }
 0x181   : > { %961 = vst [vmem:[%s2292_s30 + $0x8] sm:$0xff] %v813_v31 }
 0x182   : > { %v632_v32 = vpop.f32.mrb[4].mxu1 }
 0x183   : > { %v633_v34 = vadd.f32 %v2288_v19, %v632_v32  ;;  %v634_v35 = vpop.f32.mrb[5].mxu1  ;;  %v849_v45 = vpop.f32.mrb[20].mxu0 }
 0x184   : > { %v635_v37 = vpop.f32.mrb[6].mxu1  ;;  %v1498_v48 = vpop.f32.mrb[21].mxu0 }
 0x185   : > { %v818_v39 = vadd.f32 %v817_v11, %v633_v34  ;;  %v636_v40 = vadd.f32 %v2288_v19, %v635_v37  ;;  %v637_v41 = vpop.f32.mrb[7].mxu1  ;;  %v852_v50 = vpop.f32.mrb[22].mxu0 }
 0x186   : > { %v1499_v54 = vpop.f32.mrb[23].mxu0 }
 0x187   : > { %962 = vst [vmem:[%s2292_s30 + $0x10] sm:$0xff] %v818_v39  ;;  %v821_v43 = vadd.f32 %v820_v13, %v636_v40 }
 0x189   : > { %963 = vst [vmem:[%s2292_s30 + $0x18] sm:$0xff] %v821_v43 }
 0x18a   : > { %v640_v44 = vpop.f32.mrb[8].mxu1 }
 0x18b   : > { %v641_v46 = vadd.f32 %v2288_v19, %v640_v44  ;;  %v642_v47 = vpop.f32.mrb[9].mxu1  ;;  %v857_v57 = vpop.f32.mrb[24].mxu0 }
 0x18c   : > { %v643_v49 = vpop.f32.mrb[10].mxu1  ;;  %v1502_v59 = vpop.f32.mrb[25].mxu0 }
 0x18d   : > { %v826_v51 = vadd.f32 %v825_v15, %v641_v46  ;;  %v644_v52 = vadd.f32 %v2288_v19, %v643_v49  ;;  %v645_v53 = vpop.f32.mrb[11].mxu1  ;;  %v860_v61 = vpop.f32.mrb[26].mxu0 }
 0x18e   : > { %v1503_v2 = vpop.f32.mrb[27].mxu0 }
 0x18f   : > { %964 = vst [vmem:[%s2292_s30 + $0x20] sm:$0xff] %v826_v51  ;;  %v829_v55 = vadd.f32 %v828_v17, %v644_v52 }
 0x191   : > { %965 = vst [vmem:[%s2292_s30 + $0x28] sm:$0xff] %v829_v55 }
 0x192   : > { %v648_v56 = vpop.f32.mrb[12].mxu1 }
 0x193   : > { %v649_v58 = vadd.f32 %v2288_v19, %v648_v56  ;;  %v650_v1 = vpop.f32.mrb[13].mxu1  ;;  %v865_v5 = vpop.f32.mrb[28].mxu0 }
 0x194   : > { %v651_v60 = vpop.f32.mrb[14].mxu1  ;;  %v1506_v8 = vpop.f32.mrb[29].mxu0 }
 0x195   : > { %v834_v62 = vadd.f32 %v833_v21, %v649_v58  ;;  %v652_v63 = vadd.f32 %v2288_v19, %v651_v60  ;;  %v653_v0 = vpop.f32.mrb[15].mxu1  ;;  %v868_v10 = vpop.f32.mrb[30].mxu0 }
 0x196   : > { %v1507_v14 = vpop.f32.mrb[31].mxu0 }
 0x197   : > { %966 = vst [vmem:[%s2292_s30 + $0x30] sm:$0xff] %v834_v62  ;;  %v837_v3 = vadd.f32 %v836_v26, %v652_v63 }
 0x199   : > { %967 = vst [vmem:[%s2292_s30 + $0x38] sm:$0xff] %v837_v3 }
 0x19a   : > { %v656_v4 = vpop.f32.mrb[16].mxu1 }
 0x19b   : > { %v657_v6 = vadd.f32 %v2288_v19, %v656_v4  ;;  %v658_v7 = vpop.f32.mrb[17].mxu1  ;;  %v873_v17 = vpop.f32.mrb[32].mxu0 }
 0x19c   : > { %v659_v9 = vpop.f32.mrb[18].mxu1  ;;  %v1510_v21 = vpop.f32.mrb[33].mxu0 }
 0x19d   : > { %v842_v11 = vadd.f32 %v841_v33, %v657_v6  ;;  %v660_v12 = vadd.f32 %v2288_v19, %v659_v9  ;;  %v661_v13 = vpop.f32.mrb[19].mxu1  ;;  %v876_v23 = vpop.f32.mrb[34].mxu0 }
 0x19e   : > { %v1511_v27 = vpop.f32.mrb[35].mxu0 }
 0x19f   : > { %968 = vst [vmem:[%s2292_s30 + $0x40] sm:$0xff] %v842_v11  ;;  %v845_v15 = vadd.f32 %v844_v38, %v660_v12 }
 0x1a1   : > { %969 = vst [vmem:[%s2292_s30 + $0x48] sm:$0xff] %v845_v15 }
 0x1a2   : > { %v664_v16 = vpop.f32.mrb[20].mxu1 }
 0x1a3   : > { %v665_v18 = vadd.f32 %v2288_v19, %v664_v16  ;;  %v666_v20 = vpop.f32.mrb[21].mxu1  ;;  %v881_v30 = vpop.f32.mrb[36].mxu0 }
 0x1a4   : > { %v667_v22 = vpop.f32.mrb[22].mxu1  ;;  %v1514_v33 = vpop.f32.mrb[37].mxu0 }
 0x1a5   : > { %v850_v24 = vadd.f32 %v849_v45, %v665_v18  ;;  %v668_v25 = vadd.f32 %v2288_v19, %v667_v22  ;;  %v669_v26 = vpop.f32.mrb[23].mxu1  ;;  %v884_v35 = vpop.f32.mrb[38].mxu0 }
 0x1a6   : > { %v1515_v39 = vpop.f32.mrb[39].mxu0 }
 0x1a7   : > { %970 = vst [vmem:[%s2292_s30 + $0x50] sm:$0xff] %v850_v24  ;;  %v853_v28 = vadd.f32 %v852_v50, %v668_v25 }
 0x1a9   : > { %971 = vst [vmem:[%s2292_s30 + $0x58] sm:$0xff] %v853_v28 }
 0x1aa   : > { %v672_v29 = vpop.f32.mrb[24].mxu1 }
 0x1ab   : > { %v673_v31 = vadd.f32 %v2288_v19, %v672_v29  ;;  %v674_v32 = vpop.f32.mrb[25].mxu1  ;;  %v889_v42 = vpop.f32.mrb[40].mxu0 }
 0x1ac   : > { %v675_v34 = vpop.f32.mrb[26].mxu1  ;;  %v1518_v45 = vpop.f32.mrb[41].mxu0 }
 0x1ad   : > { %v858_v36 = vadd.f32 %v857_v57, %v673_v31  ;;  %v676_v37 = vadd.f32 %v2288_v19, %v675_v34  ;;  %v677_v38 = vpop.f32.mrb[27].mxu1  ;;  %v892_v47 = vpop.f32.mrb[42].mxu0 }
 0x1ae   : > { %v1519_v51 = vpop.f32.mrb[43].mxu0 }
 0x1af   : > { %972 = vst [vmem:[%s2292_s30 + $0x60] sm:$0xff] %v858_v36  ;;  %v861_v40 = vadd.f32 %v860_v61, %v676_v37 }
 0x1b1   : > { %973 = vst [vmem:[%s2292_s30 + $0x68] sm:$0xff] %v861_v40 }
 0x1b2   : > { %v680_v41 = vpop.f32.mrb[28].mxu1 }
 0x1b3   : > { %v681_v43 = vadd.f32 %v2288_v19, %v680_v41  ;;  %v682_v44 = vpop.f32.mrb[29].mxu1  ;;  %v897_v54 = vpop.f32.mrb[44].mxu0 }
 0x1b4   : > { %v683_v46 = vpop.f32.mrb[30].mxu1  ;;  %v1522_v57 = vpop.f32.mrb[45].mxu0 }
 0x1b5   : > { %v866_v48 = vadd.f32 %v865_v5, %v681_v43  ;;  %v684_v49 = vadd.f32 %v2288_v19, %v683_v46  ;;  %v685_v50 = vpop.f32.mrb[31].mxu1  ;;  %v900_v1 = vpop.f32.mrb[46].mxu0 }
 0x1b6   : > { %v1523_v62 = vpop.f32.mrb[47].mxu0 }
 0x1b7   : > { %974 = vst [vmem:[%s2292_s30 + $0x70] sm:$0xff] %v866_v48  ;;  %v869_v52 = vadd.f32 %v868_v10, %v684_v49 }
 0x1b9   : > { %975 = vst [vmem:[%s2292_s30 + $0x78] sm:$0xff] %v869_v52 }
 0x1ba   : > { %v688_v53 = vpop.f32.mrb[32].mxu1 }
 0x1bb   : > { %v689_v55 = vadd.f32 %v2288_v19, %v688_v53  ;;  %v690_v56 = vpop.f32.mrb[33].mxu1  ;;  %v905_v2 = vpop.f32.mrb[48].mxu0 }
 0x1bc   : > { %v691_v58 = vpop.f32.mrb[34].mxu1  ;;  %v1526_v5 = vpop.f32.mrb[49].mxu0 }
 0x1bd   : > { %v874_v59 = vadd.f32 %v873_v17, %v689_v55  ;;  %v692_v60 = vadd.f32 %v2288_v19, %v691_v58  ;;  %v693_v61 = vpop.f32.mrb[35].mxu1  ;;  %v908_v7 = vpop.f32.mrb[50].mxu0 }
 0x1be   : > { %v1527_v11 = vpop.f32.mrb[51].mxu0 }
 0x1bf   : > { %976 = vst [vmem:[%s2292_s30 + $0x80] sm:$0xff] %v874_v59  ;;  %v877_v63 = vadd.f32 %v876_v23, %v692_v60 }
 0x1c1   : > { %977 = vst [vmem:[%s2292_s30 + $0x88] sm:$0xff] %v877_v63 }
 0x1c2   : > { %v696_v0 = vpop.f32.mrb[36].mxu1 }
 0x1c3   : > { %v697_v3 = vadd.f32 %v2288_v19, %v696_v0  ;;  %v698_v4 = vpop.f32.mrb[37].mxu1  ;;  %v913_v14 = vpop.f32.mrb[52].mxu0 }
 0x1c4   : > { %v699_v6 = vpop.f32.mrb[38].mxu1  ;;  %v1530_v17 = vpop.f32.mrb[53].mxu0 }
 0x1c5   : > { %v882_v8 = vadd.f32 %v881_v30, %v697_v3  ;;  %v700_v9 = vadd.f32 %v2288_v19, %v699_v6  ;;  %v701_v10 = vpop.f32.mrb[39].mxu1  ;;  %v916_v20 = vpop.f32.mrb[54].mxu0 }
 0x1c6   : > { %v1531_v24 = vpop.f32.mrb[55].mxu0 }
 0x1c7   : > { %978 = vst [vmem:[%s2292_s30 + $0x90] sm:$0xff] %v882_v8  ;;  %v885_v12 = vadd.f32 %v884_v35, %v700_v9 }
 0x1c9   : > { %979 = vst [vmem:[%s2292_s30 + $0x98] sm:$0xff] %v885_v12 }
 0x1ca   : > { %v704_v13 = vpop.f32.mrb[40].mxu1 }
 0x1cb   : > { %v705_v15 = vadd.f32 %v2288_v19, %v704_v13  ;;  %v706_v16 = vpop.f32.mrb[41].mxu1  ;;  %v921_v27 = vpop.f32.mrb[56].mxu0 }
 0x1cc   : > { %v707_v18 = vpop.f32.mrb[42].mxu1  ;;  %v1534_v30 = vpop.f32.mrb[57].mxu0 }
 0x1cd   : > { %v890_v21 = vadd.f32 %v889_v42, %v705_v15  ;;  %v708_v22 = vadd.f32 %v2288_v19, %v707_v18  ;;  %v709_v23 = vpop.f32.mrb[43].mxu1  ;;  %v924_v32 = vpop.f32.mrb[58].mxu0 }
 0x1ce   : > { %v1535_v36 = vpop.f32.mrb[59].mxu0 }
 0x1cf   : > { %980 = vst [vmem:[%s2292_s30 + $0xa0] sm:$0xff] %v890_v21  ;;  %v893_v25 = vadd.f32 %v892_v47, %v708_v22 }
 0x1d1   : > { %981 = vst [vmem:[%s2292_s30 + $0xa8] sm:$0xff] %v893_v25 }
 0x1d2   : > { %v712_v26 = vpop.f32.mrb[44].mxu1 }
 0x1d3   : > { %v713_v28 = vadd.f32 %v2288_v19, %v712_v26  ;;  %v714_v29 = vpop.f32.mrb[45].mxu1  ;;  %v929_v39 = vpop.f32.mrb[60].mxu0 }
 0x1d4   : > { %v715_v31 = vpop.f32.mrb[46].mxu1  ;;  %v1538_v42 = vpop.f32.mrb[61].mxu0 }
 0x1d5   : > { %v898_v33 = vadd.f32 %v897_v54, %v713_v28  ;;  %v716_v34 = vadd.f32 %v2288_v19, %v715_v31  ;;  %v717_v35 = vpop.f32.mrb[47].mxu1  ;;  %v932_v44 = vpop.f32.mrb[62].mxu0 }
 0x1d6   : > { %v1539_v48 = vpop.f32.mrb[63].mxu0 }
 0x1d7   : > { %982 = vst [vmem:[%s2292_s30 + $0xb0] sm:$0xff] %v898_v33  ;;  %v901_v37 = vadd.f32 %v900_v1, %v716_v34 }
 0x1d9   : > { %983 = vst [vmem:[%s2292_s30 + $0xb8] sm:$0xff] %v901_v37 }
 0x1da   : > { %v720_v38 = vpop.f32.mrb[48].mxu1 }
 0x1db   : > { %v721_v40 = vadd.f32 %v2288_v19, %v720_v38  ;;  %v722_v41 = vpop.f32.mrb[49].mxu1  ;;  %v937_v51 = vpop.f32.mrb[64].mxu0 }
 0x1dc   : > { %v723_v43 = vpop.f32.mrb[50].mxu1  ;;  %v1542_v54 = vpop.f32.mrb[65].mxu0 }
 0x1dd   : > { %v906_v45 = vadd.f32 %v905_v2, %v721_v40  ;;  %v724_v46 = vadd.f32 %v2288_v19, %v723_v43  ;;  %v725_v47 = vpop.f32.mrb[51].mxu1  ;;  %v940_v56 = vpop.f32.mrb[66].mxu0 }
 0x1de   : > { %v1543_v59 = vpop.f32.mrb[67].mxu0 }
 0x1df   : > { %984 = vst [vmem:[%s2292_s30 + $0xc0] sm:$0xff] %v906_v45  ;;  %v909_v49 = vadd.f32 %v908_v7, %v724_v46 }
 0x1e1   : > { %985 = vst [vmem:[%s2292_s30 + $0xc8] sm:$0xff] %v909_v49 }
 0x1e2   : > { %v728_v50 = vpop.f32.mrb[52].mxu1 }
 0x1e3   : > { %v729_v52 = vadd.f32 %v2288_v19, %v728_v50  ;;  %v730_v53 = vpop.f32.mrb[53].mxu1  ;;  %v945_v62 = vpop.f32.mrb[68].mxu0 }
 0x1e4   : > { %v731_v55 = vpop.f32.mrb[54].mxu1  ;;  %v1546_v2 = vpop.f32.mrb[69].mxu0 }
 0x1e5   : > { %v914_v57 = vadd.f32 %v913_v14, %v729_v52  ;;  %v732_v58 = vadd.f32 %v2288_v19, %v731_v55  ;;  %v733_v1 = vpop.f32.mrb[55].mxu1  ;;  %v948_v4 = vpop.f32.mrb[70].mxu0 }
 0x1e6   : > { %v1547_v8 = vpop.f32.mrb[71].mxu0 }
 0x1e7   : > { %986 = vst [vmem:[%s2292_s30 + $0xd0] sm:$0xff] %v914_v57  ;;  %v917_v60 = vadd.f32 %v916_v20, %v732_v58 }
 0x1e9   : > { %987 = vst [vmem:[%s2292_s30 + $0xd8] sm:$0xff] %v917_v60 }
 0x1ea   : > { %v736_v61 = vpop.f32.mrb[56].mxu1 }
 0x1eb   : > { %v737_v63 = vadd.f32 %v2288_v19, %v736_v61  ;;  %v738_v0 = vpop.f32.mrb[57].mxu1  ;;  %v953_v11 = vpop.f32.mrb[72].mxu0 }
 0x1ec   : > { %v739_v3 = vpop.f32.mrb[58].mxu1  ;;  %v1550_v14 = vpop.f32.mrb[73].mxu0 }
 0x1ed   : > { %v922_v5 = vadd.f32 %v921_v27, %v737_v63  ;;  %v740_v6 = vadd.f32 %v2288_v19, %v739_v3  ;;  %v741_v7 = vpop.f32.mrb[59].mxu1  ;;  %v956_v16 = vpop.f32.mrb[74].mxu0 }
 0x1ee   : > { %v1551_v21 = vpop.f32.mrb[75].mxu0 }
 0x1ef   : > { %988 = vst [vmem:[%s2292_s30 + $0xe0] sm:$0xff] %v922_v5  ;;  %v925_v9 = vadd.f32 %v924_v32, %v740_v6 }
 0x1f1   : > { %989 = vst [vmem:[%s2292_s30 + $0xe8] sm:$0xff] %v925_v9 }
 0x1f2   : > { %v744_v10 = vpop.f32.mrb[60].mxu1 }
 0x1f3   : > { %v745_v12 = vadd.f32 %v2288_v19, %v744_v10  ;;  %v746_v13 = vpop.f32.mrb[61].mxu1 }
 0x1f4   : > { %v747_v15 = vpop.f32.mrb[62].mxu1 }
 0x1f5   : > { %v930_v17 = vadd.f32 %v929_v39, %v745_v12  ;;  %v748_v18 = vadd.f32 %v2288_v19, %v747_v15  ;;  %v749_v20 = vpop.f32.mrb[63].mxu1 }
 0x1f7   : > { %990 = vst [vmem:[%s2292_s30 + $0xf0] sm:$0xff] %v930_v17  ;;  %v933_v22 = vadd.f32 %v932_v44, %v748_v18 }
 0x1f9   : > { %991 = vst [vmem:[%s2292_s30 + $0xf8] sm:$0xff] %v933_v22 }
 0x1fa   : > { %v752_v23 = vpop.f32.mrb[64].mxu1 }
 0x1fb   : > { %v753_v24 = vadd.f32 %v2288_v19, %v752_v23  ;;  %v754_v25 = vpop.f32.mrb[65].mxu1 }
 0x1fc   : > { %v755_v26 = vpop.f32.mrb[66].mxu1 }
 0x1fd   : > { %v938_v27 = vadd.f32 %v937_v51, %v753_v24  ;;  %v756_v28 = vadd.f32 %v2288_v19, %v755_v26  ;;  %v757_v29 = vpop.f32.mrb[67].mxu1 }
 0x1ff   : > { %992 = vst [vmem:[%s2292_s30 + $0x100] sm:$0xff] %v938_v27  ;;  %v941_v30 = vadd.f32 %v940_v56, %v756_v28 }
 0x201   : > { %993 = vst [vmem:[%s2292_s30 + $0x108] sm:$0xff] %v941_v30 }
 0x202   : > { %v760_v31 = vpop.f32.mrb[68].mxu1 }
 0x203   : > { %v761_v32 = vadd.f32 %v2288_v19, %v760_v31  ;;  %v762_v33 = vpop.f32.mrb[69].mxu1 }
 0x204   : > { %v763_v34 = vpop.f32.mrb[70].mxu1 }
 0x205   : > { %v946_v35 = vadd.f32 %v945_v62, %v761_v32  ;;  %v764_v36 = vadd.f32 %v2288_v19, %v763_v34  ;;  %v765_v37 = vpop.f32.mrb[71].mxu1 }
 0x207   : > { %994 = vst [vmem:[%s2292_s30 + $0x110] sm:$0xff] %v946_v35  ;;  %v949_v38 = vadd.f32 %v948_v4, %v764_v36 }
 0x209   : > { %995 = vst [vmem:[%s2292_s30 + $0x118] sm:$0xff] %v949_v38 }
 0x20a   : > { %v768_v39 = vpop.f32.mrb[72].mxu1 }
 0x20b   : > { %v769_v40 = vadd.f32 %v2288_v19, %v768_v39  ;;  %v770_v41 = vpop.f32.mrb[73].mxu1  ;;  %1004 = sbr.rel (!%p2537_p6) target bundleno = 601 (0x259), region = 44 }
 0x20c   : > { %v771_v42 = vpop.f32.mrb[74].mxu1 }
 0x20d   : > { %v954_v43 = vadd.f32 %v953_v11, %v769_v40  ;;  %v772_v44 = vadd.f32 %v2288_v19, %v771_v42  ;;  %v773_v45 = vpop.f32.mrb[75].mxu1 }
 0x20f   : > { %996 = vst [vmem:[%s2292_s30 + $0x120] sm:$0xff] %v954_v43  ;;  %v957_v46 = vadd.f32 %v956_v16, %v772_v44 }
 0x211   : > { %997 = vst [vmem:[%s2292_s30 + $0x128] sm:$0xff] %v957_v46 }
 0x212   : > { %s2550_s9 = smov (!%p1007_p7, %s1006_s9), 38 }
 0x213   : > { %s1420_s12 = sshll.u32 %s2550_s9, 7 }
 0x214   : > { %p1423_p9 = scmp.eq.s32.totalorder %s1420_s12, 0 }
 0x215   : > { %1773 = sdivrem.u32 (!%p1423_p9), %s2550_s9, 38 }
 0x216   : > { %1015 = sbr.rel (%p1423_p9) target bundleno = 601 (0x259), region = 48 }
 0x21e   : > { %s2381_s23 = spop.drf %1773 }
 0x21f   : > { %p1424_p12 = scmp.le.s32.totalorder %s2381_s23, 0 }
 0x220   : > { %s2538_s16 = smov (!%p1424_p12), %s2375_s11  ;;  %s2539_s18 = smov (!%p1424_p12), %s2292_s30 }
 0x221   : > { %1328 = sbr.rel (%p1424_p12) target bundleno = 572 (0x23c), region = 130  ;;  %s2390_s19 = smov (!%p1424_p12), 0  }
 0x222   : > { %s2392_s25 = smov (!%p1424_p12), 0  }
 0x228 LB: >> { %v1153_v19 = vld [vmem:[%s1911_s18] sm:$0xff]  ;;  %v1155_v47 = vld [vmem:[%s1911_s18 + $0x8] sm:$0xff]  ;;  %v1157_v48 = vld [vmem:[%s1911_s18 + $0x10] sm:$0xff]  ;;  %s1229_s28 = sadd.s32 1, %s1915_s19  ;;  %s1147_s25 = sadd.s32 1, %s1919_s25   ;;  %s1919_s25 = sphi %s2392_s25, %s1147_s25   ;;  %s1915_s19 = sphi %s2390_s19, %s2542_s19   ;;  %s1911_s18 = sphi %s2539_s18, %s2541_s18   ;;  %s1907_s16 = sphi %s2538_s16, %s2540_s16  }
 0x229   : >> { %1154 = vst [vmem:[%s1907_s16] sm:$0xff] %v1153_v19  ;;  %1156 = vst [vmem:[%s1907_s16 + $0x8] sm:$0xff] %v1155_v47  ;;  %v1159_v49 = vld [vmem:[%s1911_s18 + $0x18] sm:$0xff]  ;;  %v1161_v50 = vld [vmem:[%s1911_s18 + $0x20] sm:$0xff]  ;;  %p1230_p0 = scmp.ge.s32.totalorder %s1229_s28, %s2381_s23  ;;  %p1146_p2 = scmp.ge.s32.totalorder %s1147_s25, %s2381_s23 }
 0x22a   : >> { %1158 = vst [vmem:[%s1907_s16 + $0x10] sm:$0xff] %v1157_v48  ;;  %v1163_v51 = vld [vmem:[%s1911_s18 + $0x28] sm:$0xff]  ;;  %1160 = vst [vmem:[%s1907_s16 + $0x18] sm:$0xff] %v1159_v49  ;;  %v1165_v52 = vld [vmem:[%s1911_s18 + $0x30] sm:$0xff] }
 0x22b   : >> { %1162 = vst [vmem:[%s1907_s16 + $0x20] sm:$0xff] %v1161_v50  ;;  %1164 = vst [vmem:[%s1907_s16 + $0x28] sm:$0xff] %v1163_v51  ;;  %v1167_v53 = vld [vmem:[%s1911_s18 + $0x38] sm:$0xff]  ;;  %v1169_v54 = vld [vmem:[%s1911_s18 + $0x40] sm:$0xff]  ;;  %s2552_s28 = smov (%p1230_p0, %s1229_s28), 0 }
 0x22c   : >> { %1166 = vst [vmem:[%s1907_s16 + $0x30] sm:$0xff] %v1165_v52  ;;  %1168 = vst [vmem:[%s1907_s16 + $0x38] sm:$0xff] %v1167_v53  ;;  %v1171_v55 = vld [vmem:[%s1911_s18 + $0x48] sm:$0xff]  ;;  %v1173_v56 = vld [vmem:[%s1911_s18 + $0x50] sm:$0xff]  ;;  %s1232_s27 = smul.u32 304, %s2552_s28  ;;  %s2542_s19 = smov %s2552_s28 }
 0x22d   : >> { %1170 = vst [vmem:[%s1907_s16 + $0x40] sm:$0xff] %v1169_v54  ;;  %v1175_v57 = vld [vmem:[%s1911_s18 + $0x58] sm:$0xff]  ;;  %1172 = vst [vmem:[%s1907_s16 + $0x48] sm:$0xff] %v1171_v55  ;;  %v1177_v58 = vld [vmem:[%s1911_s18 + $0x60] sm:$0xff] }
 0x22e   : >> { %1174 = vst [vmem:[%s1907_s16 + $0x50] sm:$0xff] %v1173_v56  ;;  %1176 = vst [vmem:[%s1907_s16 + $0x58] sm:$0xff] %v1175_v57  ;;  %v1179_v1 = vld [vmem:[%s1911_s18 + $0x68] sm:$0xff]  ;;  %v1181_v59 = vld [vmem:[%s1911_s18 + $0x70] sm:$0xff]  ;;  %s2454_s26 = scalar_lea.vmem %s2292_s30, %s1232_s27 [#allocation6]   ;;  %s2457_s21 = scalar_lea.vmem %s2375_s11, %s1232_s27  }
 0x22f   : >> { %1178 = vst [vmem:[%s1907_s16 + $0x60] sm:$0xff] %v1177_v58  ;;  %1180 = vst [vmem:[%s1907_s16 + $0x68] sm:$0xff] %v1179_v1  ;;  %v1183_v60 = vld [vmem:[%s1911_s18 + $0x78] sm:$0xff]  ;;  %v1185_v61 = vld [vmem:[%s1911_s18 + $0x80] sm:$0xff] }
 0x230   : >> { %1182 = vst [vmem:[%s1907_s16 + $0x70] sm:$0xff] %v1181_v59  ;;  %v1187_v62 = vld [vmem:[%s1911_s18 + $0x88] sm:$0xff]  ;;  %1184 = vst [vmem:[%s1907_s16 + $0x78] sm:$0xff] %v1183_v60  ;;  %v1189_v63 = vld [vmem:[%s1911_s18 + $0x90] sm:$0xff] }
 0x231   : >> { %1186 = vst [vmem:[%s1907_s16 + $0x80] sm:$0xff] %v1185_v61  ;;  %1188 = vst [vmem:[%s1907_s16 + $0x88] sm:$0xff] %v1187_v62  ;;  %v1191_v0 = vld [vmem:[%s1911_s18 + $0x98] sm:$0xff]  ;;  %v1193_v2 = vld [vmem:[%s1911_s18 + $0xa0] sm:$0xff] }
 0x232   : >> { %1190 = vst [vmem:[%s1907_s16 + $0x90] sm:$0xff] %v1189_v63  ;;  %1192 = vst [vmem:[%s1907_s16 + $0x98] sm:$0xff] %v1191_v0  ;;  %v1195_v3 = vld [vmem:[%s1911_s18 + $0xa8] sm:$0xff]  ;;  %v1197_v4 = vld [vmem:[%s1911_s18 + $0xb0] sm:$0xff] }
 0x233   : >> { %1194 = vst [vmem:[%s1907_s16 + $0xa0] sm:$0xff] %v1193_v2  ;;  %v1199_v5 = vld [vmem:[%s1911_s18 + $0xb8] sm:$0xff]  ;;  %1196 = vst [vmem:[%s1907_s16 + $0xa8] sm:$0xff] %v1195_v3  ;;  %v1201_v6 = vld [vmem:[%s1911_s18 + $0xc0] sm:$0xff] }
 0x234   : >> { %1198 = vst [vmem:[%s1907_s16 + $0xb0] sm:$0xff] %v1197_v4  ;;  %1200 = vst [vmem:[%s1907_s16 + $0xb8] sm:$0xff] %v1199_v5  ;;  %v1203_v7 = vld [vmem:[%s1911_s18 + $0xc8] sm:$0xff]  ;;  %v1205_v8 = vld [vmem:[%s1911_s18 + $0xd0] sm:$0xff] }
 0x235   : >> { %1202 = vst [vmem:[%s1907_s16 + $0xc0] sm:$0xff] %v1201_v6  ;;  %1204 = vst [vmem:[%s1907_s16 + $0xc8] sm:$0xff] %v1203_v7  ;;  %v1207_v9 = vld [vmem:[%s1911_s18 + $0xd8] sm:$0xff]  ;;  %v1209_v10 = vld [vmem:[%s1911_s18 + $0xe0] sm:$0xff]  ;;  %1149 = sbr.rel (!%p1146_p2) target bundleno = 552 (0x228), region = 136 }
 0x236   : >> { %1206 = vst [vmem:[%s1907_s16 + $0xd0] sm:$0xff] %v1205_v8  ;;  %v1211_v11 = vld [vmem:[%s1911_s18 + $0xe8] sm:$0xff]  ;;  %1208 = vst [vmem:[%s1907_s16 + $0xd8] sm:$0xff] %v1207_v9  ;;  %v1213_v12 = vld [vmem:[%s1911_s18 + $0xf0] sm:$0xff] }
 0x237   : >> { %1210 = vst [vmem:[%s1907_s16 + $0xe0] sm:$0xff] %v1209_v10  ;;  %1212 = vst [vmem:[%s1907_s16 + $0xe8] sm:$0xff] %v1211_v11  ;;  %v1215_v13 = vld [vmem:[%s1911_s18 + $0xf8] sm:$0xff]  ;;  %v1217_v14 = vld [vmem:[%s1911_s18 + $0x100] sm:$0xff] }
 0x238   : >> { %1214 = vst [vmem:[%s1907_s16 + $0xf0] sm:$0xff] %v1213_v12  ;;  %1216 = vst [vmem:[%s1907_s16 + $0xf8] sm:$0xff] %v1215_v13  ;;  %v1219_v15 = vld [vmem:[%s1911_s18 + $0x108] sm:$0xff]  ;;  %v1221_v16 = vld [vmem:[%s1911_s18 + $0x110] sm:$0xff] }
 0x239   : >> { %1218 = vst [vmem:[%s1907_s16 + $0x100] sm:$0xff] %v1217_v14  ;;  %v1223_v17 = vld [vmem:[%s1911_s18 + $0x118] sm:$0xff]  ;;  %1220 = vst [vmem:[%s1907_s16 + $0x108] sm:$0xff] %v1219_v15  ;;  %v1225_v18 = vld [vmem:[%s1911_s18 + $0x120] sm:$0xff] }
 0x23a   : >> { %1222 = vst [vmem:[%s1907_s16 + $0x110] sm:$0xff] %v1221_v16  ;;  %1224 = vst [vmem:[%s1907_s16 + $0x118] sm:$0xff] %v1223_v17  ;;  %v1227_v20 = vld [vmem:[%s1911_s18 + $0x128] sm:$0xff]  ;;  %s2541_s18 = smov %s2454_s26 }
 0x23b   : >> { %1226 = vst [vmem:[%s1907_s16 + $0x120] sm:$0xff] %v1225_v18  ;;  %1228 = vst [vmem:[%s1907_s16 + $0x128] sm:$0xff] %v1227_v20  ;;  %s2540_s16 = smov %s2457_s21 }
 0x23c PF: > { %1775 = sdivrem.u32 %s2550_s9, 38 }
 0x23d   : > { %s1425_s5 = smul.u32 304, %s2381_s23 }
 0x23f   : > { %s1240_s6 = scalar_lea.vmem %s2292_s30, %s1425_s5 [#allocation6]   ;;  %s1242_s8 = scalar_lea.vmem %s2375_s11, %s1425_s5  }
 0x245   : > { %s1776_s22 = spop.drf %1775 }
 0x246   : > { %p1427_p4 = scmp.le.s32.totalorder %s1776_s22, 0 }
 0x247   : > { %s1921_s24 = smov (!%p1427_p4), %s1242_s8   ;;  %s1925_s29 = smov (!%p1427_p4), %s1240_s6  }
 0x248   : > { %1342 = sbr.rel (%p1427_p4) target bundleno = 601 (0x259), region = 141  ;;  %s1929_s4 = smov (!%p1427_p4), 0  }
 0x249   : > { %s1933_s7 = smov (!%p1427_p4), 0  }
 0x24f LB: >> { %v1252_v21 = vld [vmem:[%s1927_s29] sm:$0xff]  ;;  %s1254_s10 = sadd.s32 1, %s1931_s4  ;;  %s1246_s7 = sadd.s32 1, %s1935_s7   ;;  %s1935_s7 = sphi %s1933_s7, %s1246_s7   ;;  %s1931_s4 = sphi %s1929_s4, %s1930_s4   ;;  %s1927_s29 = sphi %s1925_s29, %s1259_s29   ;;  %s1923_s24 = sphi %s1921_s24, %s1260_s24  }
 0x250   : >> { %1253 = vst [vmem:[%s1923_s24] sm:$0xff] %v1252_v21  ;;  %p1255_p8 = scmp.ge.s32.totalorder %s1254_s10, %s1776_s22  ;;  %p1245_p10 = scmp.ge.s32.totalorder %s1246_s7, %s1776_s22 }
 0x252   : >> { %s2554_s10 = smov (%p1255_p8, %s1254_s10), 0  ;;  %1248 = sbr.rel (!%p1245_p10) target bundleno = 591 (0x24f), region = 147 }
 0x253   : >> { %s1428_s30 = sshll.u32 %s2554_s10, 3  ;;  %s1930_s4 = smov %s2554_s10  }
 0x254   : >> { %s1259_s29 = scalar_lea.vmem %s1240_s6, %s1428_s30 [#allocation6]   ;;  %s1260_s24 = scalar_lea.vmem %s1242_s8, %s1428_s30  }
 0x259 PF: > { %p14_p13 = scmp.ge.s32.totalorder %s1988_s17, 4   ;;  %s2543_s12 = smov %s1895_s13 }
 0x25a   : > { %s2544_s13 = smov %s1899_s14  ;;  %s2545_s14 = smov %s1998_s20 }
 0x25b   : > { %s2546_s15 = smov %s1988_s17  ;;  %16 = sbr.rel (!%p14_p13) target bundleno = 4 (0x4), region = 158 }
 0x262   :  { %1276 = vsyncpa [#allocation3], 1 }
 0x263   :  { %1278 = vsyncpa [#allocation3 + $0x1], 1 }
 0x264   :  { %1279 = vsyncpa [#allocation5], 1 }

</bundles_post_ra>
